<compile_context>
chip_gen: v7x
topology: tpu7x:2x2x1
jax: 0.10.0
libtpu: 0.0.40
codegen_flags: <defaults>
</compile_context>

<pallas_src>
import jax
import jax.numpy as jnp
from jax.experimental import pallas as pl
from jax.experimental.pallas import tpu as pltpu

# Module / example dimensions
N, CIN, H, W = 2, 3, 16, 16
COUT, K = 6, 3
OH, OW = H - K + 1, W - K + 1   # stride=1, padding=0 -> 14 x 14


def conv2d_kernel(p_ref, w_ref, o_ref):
    # p_ref: (N, K*K*Cin + 1, OH*OW)  im2col patches (+ ones row for bias)
    # w_ref: (Cout, K*K*Cin + 1)      flattened weights (+ bias column)
    # o_ref: (N, Cout, OH*OW)         Cout-major, lane-dense output
    w = w_ref[...]
    for i in range(p_ref.shape[0]):                 # static N, fully unrolled
        o_ref[i] = jnp.dot(
            w, p_ref[i], preferred_element_type=jnp.float32
        ).astype(o_ref.dtype)


def conv2d_pallas(x_nchw, weight_oihw, bias):
    """Conv2d(3->6, k=3, s=1, p=0). x_nchw: (N, Cin, H, W) -> (N, Cout, OH, OW)."""
    n, cin, h, w = x_nchw.shape
    cout, _, k, _ = weight_oihw.shape
    oh, ow = h - k + 1, w - k + 1
    p = oh * ow

    # --- wrapper glue (fused by XLA under jit): im2col + bias folding ---
    taps = []
    for kh in range(k):
        for kw in range(k):
            taps.append(x_nchw[:, :, kh:kh + oh, kw:kw + ow])      # (N, Cin, OH, OW)
    patches = jnp.stack(taps, axis=2).reshape(n, cin * k * k, p)   # (N, 27, 196)
    ones = jnp.ones((n, 1, p), patches.dtype)
    patches = jnp.concatenate([patches, ones], axis=1)             # (N, 28, 196)

    w_mat = weight_oihw.reshape(cout, cin * k * k)                 # (Cout, 27)
    w_mat = jnp.concatenate([w_mat, bias.reshape(cout, 1)], axis=1)  # (Cout, 28)

    out_flat = pl.pallas_call(
        conv2d_kernel,
        out_shape=jax.ShapeDtypeStruct((n, cout, p), x_nchw.dtype),
        in_specs=[
            pl.BlockSpec(memory_space=pltpu.MemorySpace.VMEM),
            pl.BlockSpec(memory_space=pltpu.MemorySpace.VMEM),
        ],
        out_specs=pl.BlockSpec(memory_space=pltpu.MemorySpace.VMEM),
    )(patches, w_mat)

    # Contiguous split of the last dim: free, already NCHW (no transpose).
    return out_flat.reshape(n, cout, oh, ow)


def init_params(key):
    # Deterministic init mimicking PyTorch Conv2d default (uniform +/- 1/sqrt(fan_in)).
    kw_key, kb_key = jax.random.split(key)
    fan_in = CIN * K * K
    bound = 1.0 / jnp.sqrt(jnp.float32(fan_in))
    weight = jax.random.uniform(kw_key, (COUT, CIN, K, K), jnp.float32,
                                minval=-bound, maxval=bound)
    bias = jax.random.uniform(kb_key, (COUT,), jnp.float32,
                              minval=-bound, maxval=bound)
    return weight, bias


if __name__ == "__main__":
    key = jax.random.PRNGKey(0)
    x_key, p_key = jax.random.split(key)
    x = jax.random.normal(x_key, (N, CIN, H, W), jnp.float32)
    weight, bias = init_params(p_key)

    out = jax.jit(conv2d_pallas)(x, weight, bias)
    jax.block_until_ready(out)

    # Sanity check against lax reference.
    ref = jax.lax.conv_general_dilated(
        x, weight, window_strides=(1, 1), padding="VALID",
        dimension_numbers=("NCHW", "OIHW", "NCHW")) + bias[None, :, None, None]
    assert out.shape == (N, COUT, OH, OW)
    assert jnp.allclose(out, ref, atol=1e-4, rtol=1e-4)

    print("KERNEL_OK")
</pallas_src>

<mosaic_0001>
module attributes {stable_mosaic.version = 11 : i64} {
  func.func @conv2d_kernel(%arg0: memref<2x28x196xf32, #tpu.memory_space<vmem>>, %arg1: memref<6x28xf32, #tpu.memory_space<vmem>>, %arg2: memref<2x6x196xf32, #tpu.memory_space<vmem>>) attributes {dimension_semantics = [], scalar_prefetch = 0 : i64, scratch_operands = 0 : i64, tpu.core_type = #tpu.core_type<tc>} {
    %c0 = arith.constant 0 : index
    %c0_0 = arith.constant 0 : index
    %0 = vector.load %arg1[%c0, %c0_0] : memref<6x28xf32, #tpu.memory_space<vmem>>, vector<6x28xf32>
    %c0_1 = arith.constant 0 : index
    %c0_2 = arith.constant 0 : index
    %c0_3 = arith.constant 0 : index
    %1 = vector.load %arg0[%c0_1, %c0_2, %c0_3] : memref<2x28x196xf32, #tpu.memory_space<vmem>>, vector<1x28x196xf32>
    %2 = vector.shape_cast %1 : vector<1x28x196xf32> to vector<28x196xf32>
    %cst = arith.constant dense<0.000000e+00> : vector<6x196xf32>
    %3 = tpu.matmul %0, %2, %cst {dimension_numbers = #tpu.dot_dimension_numbers<[1], [0], [0], [1], [0, 0, 1, 1], [], []>} : vector<6x28xf32>, vector<28x196xf32>, vector<6x196xf32> -> vector<6x196xf32>
    %c0_4 = arith.constant 0 : index
    %c0_5 = arith.constant 0 : index
    %c0_6 = arith.constant 0 : index
    %4 = vector.load %arg2[%c0_4, %c0_5, %c0_6] : memref<2x6x196xf32, #tpu.memory_space<vmem>>, vector<1x6x196xf32>
    %5 = vector.shape_cast %4 : vector<1x6x196xf32> to vector<6x196xf32>
    %6 = vector.shape_cast %3 : vector<6x196xf32> to vector<1x6x196xf32>
    tpu.vector_store %arg2[%c0_4, %c0_5, %c0_6], %6 {strides = array<i32>} : memref<2x6x196xf32, #tpu.memory_space<vmem>>, vector<1x6x196xf32>,
    %c1 = arith.constant 1 : index
    %c0_7 = arith.constant 0 : index
    %c0_8 = arith.constant 0 : index
    %7 = vector.load %arg0[%c1, %c0_7, %c0_8] : memref<2x28x196xf32, #tpu.memory_space<vmem>>, vector<1x28x196xf32>
    %8 = vector.shape_cast %7 : vector<1x28x196xf32> to vector<28x196xf32>
    %cst_9 = arith.constant dense<0.000000e+00> : vector<6x196xf32>
    %9 = tpu.matmul %0, %8, %cst_9 {dimension_numbers = #tpu.dot_dimension_numbers<[1], [0], [0], [1], [0, 0, 1, 1], [], []>} : vector<6x28xf32>, vector<28x196xf32>, vector<6x196xf32> -> vector<6x196xf32>
    %c1_10 = arith.constant 1 : index
    %c0_11 = arith.constant 0 : index
    %c0_12 = arith.constant 0 : index
    %10 = vector.load %arg2[%c1_10, %c0_11, %c0_12] : memref<2x6x196xf32, #tpu.memory_space<vmem>>, vector<1x6x196xf32>
    %11 = vector.shape_cast %10 : vector<1x6x196xf32> to vector<6x196xf32>
    %12 = vector.shape_cast %9 : vector<6x196xf32> to vector<1x6x196xf32>
    tpu.vector_store %arg2[%c1_10, %c0_11, %c0_12], %12 {strides = array<i32>} : memref<2x6x196xf32, #tpu.memory_space<vmem>>, vector<1x6x196xf32>,
    return
  }
}

</mosaic_0001>

<bundles_post_ra>
// kernel: conv2d_pallas.1
= control target key start
LH: loop header
LB: loop body
LE: loop exit
PB: predicated region body
PF: predicated region fallthrough
CT: control target
= control target key end

     0   :  { %vm24_vm0 = vcmask 1043456   ;;  %v236_v3 = vmov 0.0   ;;  %vm237_vm1 = vmmov 1   ;;  %vm20_vm3 = vcmask 228352   ;;  %s329_s0 = inlined_call_operand.vmem [shape: f32[2,28,196], index: 0, kind: input, shape index: {}]   ;;  %s330_s1 = inlined_call_operand.vmem [shape: f32[6,28], index: 1, kind: input, shape index: {}]   ;;  %s331_s2 = inlined_call_operand.vmem [shape: f32[2,6,196], index: 2, kind: output, shape index: {}]  }
   0x1   :  { %v13_v0 = vld [vmem:[%s329_s0 + $0x8] sm:$0xff]  ;;  %v15_v1 = vld [vmem:[%s329_s0 + $0x18] sm:$0xff]  ;;  %95 = vmatprep.mubr.f32.mxu0 %v236_v3  ;;  %184 = vmatprep.mubr.f32.mxu1 %v236_v3  ;;  %v12_v6 = vld [vmem:[%s329_s0] sm:$0xff]  ;;  %vm103_vm4 = vcmask 553984  }
   0x2   :  { %v202_v2 = vld [vmem:[%s329_s0 + $0x48] sm:$0xff]  ;;  %v214_v4 = vpack.c.bf16 %v15_v1, %v13_v0  ;;  %v204_v5 = vld [vmem:[%s329_s0 + $0x58] sm:$0xff]  ;;  %v14_v7 = vld [vmem:[%s329_s0 + $0x10] sm:$0xff] }
   0x3   :  { %v224_v8 = vpack.c.bf16 %v204_v5, %v202_v2  ;;  %v216_v9 = vpack.c.bf16 %v14_v7, %v12_v6  ;;  %v201_v10 = vld [vmem:[%s329_s0 + $0x40] sm:$0xff]  ;;  %v203_v11 = vld [vmem:[%s329_s0 + $0x50] sm:$0xff]  ;;  %v17_v12 = vld [vmem:[%s329_s0 + $0x28] sm:$0xff] }
   0x4   :  { %215 = vmatprep.subr.bf16.mxu0 %v214_v4  ;;  %v226_v13 = vpack.c.bf16 %v203_v11, %v201_v10  ;;  %v19_v14 = vld [vmem:[%s329_s0 + $0x38] sm:$0xf]  ;;  %vm284_vm2 = vmpackc.low %vm24_vm0, %vm237_vm1  ;;  %v206_v16 = vld [vmem:[%s329_s0 + $0x68] sm:$0xff] }
   0x5   :  { %225 = vmatprep.subr.bf16.mxu1 %v224_v8  ;;  %217 = vmatpush1.bf16.msra.mxu0 %v216_v9  ;;  %v218_v17 = vpack.c.bf16 %v19_v14, %v17_v12  ;;  %v208_v18 = vld [vmem:[%s329_s0 + $0x78] sm:$0xf]  ;;  %v16_v19 = vld [vmem:[%s329_s0 + $0x20] sm:$0xff]  ;;  %v18_v20 = vld [vmem:[%s329_s0 + $0x30] sm:$0xf] }
   0x6   :  { %227 = vmatpush1.bf16.msra.mxu1 %v226_v13  ;;  %v228_v21 = vpack.c.bf16 %v208_v18, %v206_v16  ;;  %v221_v22 = vpack.c.bf16 %v18_v20, %v16_v19  ;;  %v205_v23 = vld [vmem:[%s329_s0 + $0x60] sm:$0xff]  ;;  %v207_v24 = vld [vmem:[%s329_s0 + $0x70] sm:$0xf] }
   0x7   :  { %220 = vmatprep.subr.msk.bf16.mxu0 %vm284_vm2, %v218_v17  ;;  %v231_v25 = vpack.c.bf16 %v207_v24, %v205_v23  ;;  %v11_v26 = vld [vmem:[%s330_s1] sm:$0x3f] }
   0x8   :  { %230 = vmatprep.subr.msk.bf16.mxu1 %vm284_vm2, %v228_v21 }
   0x9   :  { %223 = vmatpush1.bf16.msk.msra.mxu0 %vm284_vm2, %v221_v22 }
   0xa   :  { %233 = vmatpush1.bf16.msk.msra.mxu1 %vm284_vm2, %v231_v25 }
   0xc   :  { %200 = vmatmul.mubr.msk.f32.vlgmr.msra.gmra.mrb[0].mxu0 %vm20_vm3, %v11_v26 }
   0xd   :  { %211 = vmatmul.mubr.msk.f32.vlgmr.msra.gmra.mrb[0].mxu1 %vm20_vm3, %v11_v26 }
  0xdf   :  { %v97_v27 = vpop.f32.mrb[0].mxu0 }
  0xe0   :  { %102 = vst [vmem:[%s331_s2] sm:$0x3f] %v97_v27  ;;  %v186_v28 = vpop.f32.mrb[0].mxu1  ;;  %v99_v29 = vpop.f32.mrb[1].mxu0 }
  0xe1   :  { %212 = vst [vmem:[%s331_s2 + $0x10] sm:$0x3f] %v186_v28  ;;  %104 = vst.msk [vmem:[%s331_s2 + $0x8] sm:$0x3f] %vm103_vm4, %v99_v29  ;;  %v188_v30 = vpop.f32.mrb[1].mxu1 }
  0xe2   :  { %213 = vst.msk [vmem:[%s331_s2 + $0x18] sm:$0x3f] %vm103_vm4, %v188_v30 }

</bundles_post_ra>
